<compile_context>
chip_gen: v7x
topology: tpu7x:2x2x1
jax: 0.10.0
libtpu: 0.0.40
codegen_flags: <defaults>
</compile_context>

<pallas_src>
import functools

import jax
import jax.numpy as jnp
from jax import lax
from jax.experimental import pallas as pl
from jax.experimental.pallas import tpu as pltpu

LANES = 128
SUBLANES = 8
TILE_ROWS = 1024            # (1024,128) f32 tile = 512 KiB; 2 inputs x 2 bufs ≈ 2 MiB
NUM_CORE_SPLITS = 2         # leading "parallel" grid axis (v7x has 2 TCs/chip)
SMALL_PATH_MAX_ROWS = 8192  # <= 1M elems -> <= 8 MiB f32 resident; safe on v5e defaults


def _hinge_loss_small_kernel(o_ref, t_ref, out_ref, *, inv_n2):
    # o_ref, t_ref: (rows, LANES) VMEM slabs (full arrays, single invocation)
    # out_ref:      (1, 1) SMEM scalar output
    o = o_ref[...].astype(jnp.float32)
    t = t_ref[...].astype(jnp.float32)
    # max(0, 1 - (2o-1)(2t-1)) == 2 * max(0, (o+t) - 2*o*t); the 2 lives in inv_n2.
    hinge_half = jnp.maximum((o + t) - 2.0 * (o * t), 0.0)
    mean = jnp.sum(hinge_half) * inv_n2   # inv_n2 = 2/n baked in at trace time
    out_ref[0, 0] = mean * mean


def _hinge_partial_sums_kernel(o_ref, t_ref, acc_ref, *, valid_rows, mask_rows):
    # o_ref, t_ref: (TILE_ROWS, LANES) VMEM tiles (auto double-buffered)
    # acc_ref:      (SUBLANES, LANES) f32 output block, resident across the
    #               "arbitrary" block axis -> per-core partial-sum accumulator.
    c = pl.program_id(0)          # core split ("parallel")
    i = pl.program_id(1)          # block within this core's stripe ("arbitrary")
    nblk = pl.num_programs(1)

    @pl.when(i == 0)
    def _():
        acc_ref[...] = jnp.zeros_like(acc_ref)

    o = o_ref[...].astype(jnp.float32)
    t = t_ref[...].astype(jnp.float32)
    hinge_half = jnp.maximum((o + t) - 2.0 * (o * t), 0.0)

    if mask_rows:
        # The last block hangs over the end of the array; Pallas pads it with
        # unspecified values, so zero those rows before accumulating.
        base_row = (c * nblk + i) * TILE_ROWS
        row_ids = base_row + lax.broadcasted_iota(jnp.int32, hinge_half.shape, 0)
        hinge_half = jnp.where(row_ids < valid_rows, hinge_half, 0.0)

    # Per-lane partial sums: pure VPU (elementwise vreg) adds each step; the
    # single cross-lane (XLU) reduce happens once, in the wrapper epilogue.
    acc_ref[...] += hinge_half.reshape(-1, SUBLANES, LANES).sum(axis=0)


def my_hinge_loss(output, target):
    assert output.shape == target.shape
    n = int(output.size)          # Python int at trace time

    # Keep the caller's dtype (bf16 stays bf16 over HBM); cast happens in-kernel.
    o = output.reshape(-1)
    t = target.reshape(-1)

    rows = pl.cdiv(n, LANES)
    pad = rows * LANES - n
    if pad:
        # Tail-only zero pad (< 128 elements): a (0, 0) pair has hinge == 0,
        # so padding contributes nothing and the mean still divides by the
        # true n.  Lane-aligned shapes (like (2, 4, 16, 16)) skip this copy.
        o = jnp.pad(o, (0, pad))
        t = jnp.pad(t, (0, pad))
    o2 = o.reshape(rows, LANES)
    t2 = t.reshape(rows, LANES)

    inv_n2 = 2.0 / n  # folds the mean's 1/n and the algebraic factor 2
    bytes_accessed = rows * LANES * (o2.dtype.itemsize + t2.dtype.itemsize) + 4
    cost = pl.CostEstimate(flops=5 * n, transcendentals=0,
                           bytes_accessed=bytes_accessed)

    if rows <= SMALL_PATH_MAX_ROWS:
        # --- Small path: one invocation, everything resident in VMEM. ---
        out = pl.pallas_call(
            functools.partial(_hinge_loss_small_kernel, inv_n2=inv_n2),
            out_shape=jax.ShapeDtypeStruct((1, 1), jnp.float32),
            in_specs=[pl.BlockSpec(memory_space=pltpu.VMEM),
                      pl.BlockSpec(memory_space=pltpu.VMEM)],
            out_specs=pl.BlockSpec(memory_space=pltpu.SMEM),
            cost_estimate=cost,
        )(o2, t2)
        return out[0, 0]

    # --- Large-n path: gridded, double-buffered, HBM-bound reduction. ---
    nblk_total = pl.cdiv(rows, TILE_ROWS)
    # Split blocks across TensorCores (v7x) only when they divide evenly, so
    # no grid step ever maps to a fully out-of-bounds tile.  Harmless on the
    # single-TC v5e/v6e (the "parallel" axis just iterates).
    core_splits = NUM_CORE_SPLITS if nblk_total % NUM_CORE_SPLITS == 0 else 1
    nblk_pc = nblk_total // core_splits
    mask_rows = (nblk_total * TILE_ROWS) != rows   # last block is partial

    def in_map(c, i):
        return (c * nblk_pc + i, 0)

    kernel = functools.partial(_hinge_partial_sums_kernel,
                               valid_rows=rows, mask_rows=mask_rows)
    partials = pl.pallas_call(
        kernel,
        out_shape=jax.ShapeDtypeStruct((core_splits * SUBLANES, LANES),
                                       jnp.float32),
        grid_spec=pltpu.PrefetchScalarGridSpec(
            num_scalar_prefetch=0,
            grid=(core_splits, nblk_pc),
            in_specs=[pl.BlockSpec((TILE_ROWS, LANES), in_map),
                      pl.BlockSpec((TILE_ROWS, LANES), in_map)],
            out_specs=pl.BlockSpec((SUBLANES, LANES), lambda c, i: (c, 0)),
        ),
        compiler_params=pltpu.CompilerParams(
            dimension_semantics=("parallel", "arbitrary")),
        cost_estimate=cost,
    )(o2, t2)

    # Tiny epilogue on <= 2*(8,128) f32: cross-lane reduce, scale, square.
    mean = jnp.sum(partials) * inv_n2
    return mean * mean


if __name__ == "__main__":
    key = jax.random.PRNGKey(0)
    k1, k2, k3, k4 = jax.random.split(key, 4)

    def reference(o, t):
        y_hat = o * 2 - 1
        y_true = t * 2 - 1
        return jnp.maximum(1 - y_hat * y_true, 0).mean() ** 2

    # Primary (small) case: binary-classifier-style inputs, NCHW (2, 4, 16, 16).
    output = jax.random.uniform(k1, (2, 4, 16, 16), dtype=jnp.float32)
    target = jax.random.bernoulli(k2, 0.5, (2, 4, 16, 16)).astype(jnp.float32)
    loss = my_hinge_loss(output, target)
    jax.block_until_ready(loss)
    ref = reference(output, target)
    assert jnp.allclose(loss, ref, rtol=1e-5, atol=1e-6), (loss, ref)

    # Secondary check: large, lane-misaligned input exercising the gridded
    # (double-buffered, core-split, masked-tail) reduction path.
    n_big = 15_460 * LANES - 37          # > small-path threshold, n % 128 != 0
    out_big = jax.random.uniform(k3, (n_big,), dtype=jnp.float32)
    tgt_big = jax.random.bernoulli(k4, 0.5, (n_big,)).astype(jnp.float32)
    loss_big = my_hinge_loss(out_big, tgt_big)
    jax.block_until_ready(loss_big)
    ref_big = reference(out_big, tgt_big)
    assert jnp.allclose(loss_big, ref_big, rtol=1e-4, atol=1e-6), (loss_big, ref_big)

    print("KERNEL_OK")
</pallas_src>

<mosaic_0001>
module attributes {stable_mosaic.version = 11 : i64} {
  func.func @_hinge_loss_small_kernel(%arg0: memref<16x128xf32, #tpu.memory_space<vmem>>, %arg1: memref<16x128xf32, #tpu.memory_space<vmem>>, %arg2: memref<1x1xf32, #tpu.memory_space<smem>>) attributes {dimension_semantics = [], scalar_prefetch = 0 : i64, scratch_operands = 0 : i64, tpu.core_type = #tpu.core_type<tc>} {
    %c0 = arith.constant 0 : index
    %c0_0 = arith.constant 0 : index
    %0 = vector.load %arg0[%c0, %c0_0] : memref<16x128xf32, #tpu.memory_space<vmem>>, vector<16x128xf32>
    %c0_1 = arith.constant 0 : index
    %c0_2 = arith.constant 0 : index
    %1 = vector.load %arg1[%c0_1, %c0_2] : memref<16x128xf32, #tpu.memory_space<vmem>>, vector<16x128xf32>
    %2 = arith.addf %0, %1 : vector<16x128xf32>
    %3 = arith.mulf %0, %1 : vector<16x128xf32>
    %cst = arith.constant 2.000000e+00 : f32
    %4 = vector.broadcast %cst : f32 to vector<16x128xf32>
    %5 = arith.mulf %4, %3 : vector<16x128xf32>
    %6 = arith.subf %2, %5 : vector<16x128xf32>
    %cst_3 = arith.constant 0.000000e+00 : f32
    %7 = vector.broadcast %cst_3 : f32 to vector<16x128xf32>
    %8 = arith.maximumf %6, %7 : vector<16x128xf32>
    %9 = vector.shape_cast %8 : vector<16x128xf32> to vector<1x16x128xf32>
    %cst_4 = arith.constant dense<0.000000e+00> : vector<1xf32>
    %10 = vector.multi_reduction <add>, %9, %cst_4 [1, 2] : vector<1x16x128xf32> to vector<1xf32>
    %11 = vector.shape_cast %10 : vector<1xf32> to vector<1x1x1xf32>
    %12 = vector.extract %11[0, 0, 0] : f32 from vector<1x1x1xf32>
    %cst_5 = arith.constant 9.765625E-4 : f32
    %13 = arith.mulf %12, %cst_5 : f32
    %14 = arith.mulf %13, %13 : f32
    %c0_6 = arith.constant 0 : index
    %c0_7 = arith.constant 0 : index
    %15 = memref.load %arg2[%c0_6, %c0_7] : memref<1x1xf32, #tpu.memory_space<smem>>
    memref.store %14, %arg2[%c0_6, %c0_7] : memref<1x1xf32, #tpu.memory_space<smem>>
    return
  }
}

</mosaic_0001>

<bundles_post_ra>
// kernel: tpu_custom_call.1
= control target key start
LH: loop header
LB: loop body
LE: loop exit
PB: predicated region body
PF: predicated region fallthrough
CT: control target
= control target key end

     0   :  { %7 = vsyncpa [#allocation3], 0  ;;  %s206_s0 = inlined_call_operand.hbm [shape: f32[16,128], index: 0, kind: input, shape index: {}]   ;;  %s207_s1 = inlined_call_operand.hbm [shape: f32[16,128], index: 1, kind: input, shape index: {}]   ;;  %s208_s2 = inlined_call_operand.hbm [shape: f32[1,1], index: 2, kind: output, shape index: {}]  }
   0x1   :  { %8 = vsyncpa [#allocation6], 0 }
   0x2   :  { %9 = vsyncpa [#allocation4], 0  ;;  %s150_s9 = smov [#allocation2]   ;;  %s90_s13 = scalar_lea.hbm %s206_s0, 256 }
   0x3   :  { %s15_s10 = sshll.u32 %s150_s9, 4  ;;  %p91_p0 = scmp.ne.s32.totalorder %s206_s0, %s90_s13  ;;  %s16_s10 = int_to_ptr.vmem [resolvable:$true] %s15_s10 }
   0x4   :  { %p94_p1 = scmp.lt.u32.totalorder %s90_s13, %s206_s0 }
   0x6   :  { %p96_p2 = pnand %p94_p1, %p91_p0 }
   0x8   :  { %99 = shalt.err (!%p96_p2)
}
   0x9   :  { %s100_s18 = scalar_lea.vmem %s16_s10, 256  ;;  %p105_p4 = scmp.lt.s32.totalorder %s16_s10, %s16_s10 }
   0xa   :  { %p101_p3 = scmp.ne.s32.totalorder %s16_s10, %s100_s18  ;;  %p106_p5 = scmp.lt.s32.totalorder %s100_s18, %s100_s18 }
   0xc   :  { %p107_p6 = por %p106_p5, %p105_p4 }
   0xe   :  { %p108_p7 = pnand %p107_p6, %p101_p3 }
  0x10   :  { %111 = shalt.err (!%p108_p7)
}
  0x11   :  { %s151_s19 = smov 128   ;;  %s152_s20 = smov 8  }
  0x12   :  { %21 = dma.hbm_to_vmem [thread:$0]  %s206_s0, 256, %s16_s10, [#allocation3], %s151_s19, %s151_s19, %s152_s20  }
  0x13   :  { %s153_s23 = smov [#allocation5]   ;;  %s112_s27 = scalar_lea.hbm %s207_s1, 256 }
  0x14   :  { %s27_s24 = sshll.u32 %s153_s23, 4  ;;  %p113_p8 = scmp.ne.s32.totalorder %s207_s1, %s112_s27  ;;  %s28_s24 = int_to_ptr.vmem [resolvable:$true] %s27_s24 }
  0x15   :  { %p116_p9 = scmp.lt.u32.totalorder %s112_s27, %s207_s1 }
  0x17   :  { %p118_p10 = pnand %p116_p9, %p113_p8 }
  0x19   :  { %121 = shalt.err (!%p118_p10)
}
  0x1a   :  { %s122_s4 = scalar_lea.vmem %s28_s24, 256  ;;  %p127_p12 = scmp.lt.s32.totalorder %s28_s24, %s28_s24 }
  0x1b   :  { %p123_p11 = scmp.ne.s32.totalorder %s28_s24, %s122_s4  ;;  %p128_p13 = scmp.lt.s32.totalorder %s122_s4, %s122_s4 }
  0x1d   :  { %p129_p0 = por %p128_p13, %p127_p12 }
  0x1f   :  { %p130_p1 = pnand %p129_p0, %p123_p11 }
  0x21   :  { %133 = shalt.err (!%p130_p1)
}
  0x22   :  { %33 = dma.hbm_to_vmem [thread:$0]  %s207_s1, 256, %s28_s24, [#allocation6], %s151_s19, %s151_s19, %s152_s20  }
  0x23   :  { %144 = dma.done.wait [#allocation3], 256  }
  0x24   :  { %145 = vsyncadd [#allocation3], 4294967040 }
  0x25   :  { %146 = dma.done.wait [#allocation6], 256  }
  0x26   :  { %147 = vsyncadd [#allocation6], 4294967040  ;;  %v40_v0 = vld [vmem:[#allocation2] sm:$0xff]  ;;  %v41_v1 = vld [vmem:[#allocation2 + $0x8] sm:$0xff]  ;;  %s134_s10 = scalar_lea.hbm %s208_s2, 16 }
  0x27   :  { %v42_v2 = vld [vmem:[#allocation5] sm:$0xff]  ;;  %v43_v3 = vld [vmem:[#allocation5 + $0x8] sm:$0xff]  ;;  %p135_p2 = scmp.ne.s32.totalorder %s208_s2, %s134_s10  ;;  %p138_p3 = scmp.lt.u32.totalorder %s134_s10, %s208_s2 }
  0x28   :  { %v44_v4 = vadd.f32 %v42_v2, %v40_v0  ;;  %v46_v5 = vmul.f32 %v42_v2, %v40_v0  ;;  %v45_v6 = vadd.f32 %v43_v3, %v41_v1  ;;  %v47_v7 = vmul.f32 %v43_v3, %v41_v1 }
  0x29   :  { %p140_p4 = pnand %p138_p3, %p135_p2 }
  0x2a   :  { %v48_v8 = vmul.f32 2.0, %v46_v5  ;;  %v49_v9 = vmul.f32 2.0, %v47_v7 }
  0x2c   :  { %v50_v10 = vsub.f32 %v44_v4, %v48_v8  ;;  %v51_v11 = vsub.f32 %v45_v6, %v49_v9 }
  0x2e   :  { %v52_v12 = vmax.f32 %v50_v10, 0.0  ;;  %v53_v13 = vmax.f32 %v51_v11, 0.0 }
  0x30   :  { %v54_v14 = vadd.f32 %v53_v13, %v52_v12 }
  0x32   :  { %55 = vadd.xlane.f32.xlu0 %v54_v14 }
  0xbf   :  { %v56_v15 = vpop.xlane.xlu0 %55 }
  0xc0   :  { %v57_v16 = vrot.slane %v56_v15, 4 }
  0xc2   :  { %v58_v17 = vadd.f32 %v57_v16, %v56_v15 }
  0xc4   :  { %v59_v18 = vrot.slane %v58_v17, 2 }
  0xc6   :  { %v60_v19 = vadd.f32 %v59_v18, %v58_v17 }
  0xc8   :  { %v61_v20 = vrot.slane %v60_v19, 1 }
  0xca   :  { %v62_v21 = vadd.f32 %v61_v20, %v60_v19 }
  0xcc   :  { %83 = vpush %v62_v21 }
  0xfd   :  { %s84_s1 = spop %83 }
  0xfe   :  { %s64_s6 = smul.f32 0.0009765625, %s84_s1 }
 0x100   :  { %s65_s7 = smul.f32 %s64_s6, %s64_s6 }
 0x102   :  { %67 = sst [smem:[#allocation7]] %s65_s7 }
 0x103   :  { %143 = shalt.err (!%p140_p4)
}
 0x104   :  { %s154_s15 = smov [#allocation7]  }
 0x105   :  { %75 = dma.smem_to_hbm %s154_s15, 16, %s208_s2, [#allocation4]  }
 0x106   :  { %148 = dma.done.wait [#allocation4], 16  }
 0x107   :  { %149 = vsyncadd [#allocation4], 4294967280 }
 0x108   :  { %79 = sfence }
 0x109   :  { %80 = vsyncpa [#allocation3], 1 }
 0x10a   :  { %81 = vsyncpa [#allocation6], 1 }
 0x10b   :  { %82 = vsyncpa [#allocation4], 1 }

</bundles_post_ra>
